<compile_context>
chip_gen: v5e
topology: v5e:2x2
jax: 0.10.0
libtpu: 0.0.40
codegen_flags: <defaults>
</compile_context>

<pallas_src>
import jax
import jax.numpy as jnp
from jax import lax
from jax.experimental import pallas as pl
from jax.experimental.pallas import tpu as pltpu

EPS = 1e-5


def _center_norm_relu(h, mean, inv_n):
    """InstanceNorm over points (axis=1; biased var, eps, no affine) + ReLU.

    h:    (bt, N, C) f32 pre-activation
    mean: (bt, 1, C) f32 per-element channel means of h
    Returns (bf16 activations for the next MXU matmul,
             f32 (bt, C) channel means of the activations -> next layer's
             mean-via-linearity).
    """
    c = h - mean
    var = jnp.sum(c * c, axis=1, keepdims=True) * inv_n
    y = jnp.maximum(c * lax.rsqrt(var + EPS), 0.0)
    return y.astype(jnp.bfloat16), jnp.sum(y, axis=1) * inv_n


def pointnetfeat_kernel(a1_ref, w2_ref, w3_ref, o_ref):
    # a1_ref: (bt, N, 64) bf16 conv1 output tile (channels on lanes).
    # o_ref:  (bt, 1, 256) f32.
    bt, n, c1 = a1_ref.shape
    c2 = w2_ref.shape[1]
    c3 = w3_ref.shape[1]
    inv_n = 1.0 / n

    w2 = w2_ref[...]
    w3 = w3_ref[...]

    # ---- Layer 1: InstanceNorm + ReLU on the (hoisted) conv1 output.
    a1 = a1_ref[...].astype(jnp.float32)                           # (bt, N, 64)
    mean1 = jnp.sum(a1, axis=1, keepdims=True) * inv_n
    y1, my1 = _center_norm_relu(a1, mean1, inv_n)

    # ---- Layer 2: one flattened (bt*N, 64) @ (64, 128) MXU matmul.
    h2 = jnp.dot(y1.reshape(bt * n, c1), w2,
                 preferred_element_type=jnp.float32).reshape(bt, n, c2)
    # mean_n(y1 @ W2) = mean_n(y1) @ W2  (no bias: it is cancelled by the norm)
    mean2 = jnp.dot(my1.astype(jnp.bfloat16), w2,
                    preferred_element_type=jnp.float32)[:, None, :]
    y2, my2 = _center_norm_relu(h2, mean2, inv_n)

    # ---- Layer 3: flattened matmul; final InstanceNorm folded into max-pool.
    h3 = jnp.dot(y2.reshape(bt * n, c2), w3,
                 preferred_element_type=jnp.float32).reshape(bt, n, c3)
    mean3 = jnp.dot(my2.astype(jnp.bfloat16), w3,
                    preferred_element_type=jnp.float32)[:, None, :]
    mx = jnp.max(h3, axis=1, keepdims=True)                        # (bt, 1, 256)
    sumsq = jnp.sum(h3 * h3, axis=1, keepdims=True)
    var3 = jnp.maximum(sumsq * inv_n - mean3 * mean3, 0.0)
    o_ref[...] = ((mx - mean3) * lax.rsqrt(var3 + EPS)).astype(o_ref.dtype)


def _vmem_per_step_bytes(bt, n):
    """Coarse peak-VMEM estimate for one grid step."""
    in_block = bt * n * 64 * 2            # bf16 input block (double-buffered)
    y1 = bt * n * 64 * 2                  # bf16
    h2 = bt * n * 128 * 4                 # f32
    y2 = bt * n * 128 * 2                 # bf16
    h3 = bt * n * 256 * 4                 # f32
    weights = 2 * (64 * 128 + 128 * 256) * 2
    return 2 * in_block + y1 + h2 + y2 + h3 + weights + (2 << 20)


def _device_tuning():
    """Returns (vmem_limit_bytes, min_grid_steps) for the local TPU generation."""
    kind = ""
    try:
        kind = jax.devices()[0].device_kind.lower()
    except Exception:
        pass
    if "v7" in kind:                       # 64 MiB VMEM, 2 TensorCores/chip
        return 48 * 1024 * 1024, 2
    if "v4" in kind or "v5p" in kind:      # megacore parts: keep both cores fed
        return 64 * 1024 * 1024, 2
    # v5e / v6e: 128 MiB physical VMEM, single TensorCore -> grid of 1 is fine.
    return 96 * 1024 * 1024, 1


def _pick_block_b(batch, n_pts, budget_bytes, min_steps):
    """Largest divisor of batch whose tile fits the VMEM budget and keeps at
    least `min_steps` grid steps (only enforced on multi-TensorCore parts)."""
    best = 1
    for d in range(1, batch + 1):
        if batch % d != 0:
            continue
        if batch // d < min(min_steps, batch):
            continue
        if _vmem_per_step_bytes(d, n_pts) <= budget_bytes:
            best = d
    return best


def pointnetfeat(x_ncw, params):
    """x_ncw: (B, 3, N) float32 (PyTorch NCW layout). Returns (B, 256) float32."""
    B, c_in, N = x_ncw.shape
    assert c_in == 3
    # Biases are mathematically no-ops (cancelled by InstanceNorm mean).
    w1, _b1, w2, _b2, w3, _b3 = params

    # conv1 (1x1, 3->64) hoisted to XLA: avoids a lane-padded (N, 3) kernel
    # block and a K=3 MXU matmul; the kernel input is contiguous (B, N, 64).
    x_bnc = jnp.transpose(x_ncw, (0, 2, 1)).astype(jnp.float32)       # (B, N, 3)
    a1 = jnp.einsum("bnc,cd->bnd", x_bnc, w1).astype(jnp.bfloat16)    # (B, N, 64)
    w2b = w2.astype(jnp.bfloat16)
    w3b = w3.astype(jnp.bfloat16)

    vmem_limit, min_steps = _device_tuning()
    bt = _pick_block_b(B, N, int(0.75 * vmem_limit), min_steps)
    grid = (B // bt,)

    const = lambda shape: pl.BlockSpec(shape, lambda b: (0,) * len(shape))
    flops = 2 * B * N * (64 * 128 + 128 * 256)
    bytes_accessed = (a1.size * 2) + (w2b.size + w3b.size) * 2 + B * 256 * 4

    out = pl.pallas_call(
        pointnetfeat_kernel,
        out_shape=jax.ShapeDtypeStruct((B, 1, 256), jnp.float32),
        grid=grid,
        in_specs=[
            pl.BlockSpec((bt, N, 64), lambda b: (b, 0, 0)),
            const(w2b.shape),
            const(w3b.shape),
        ],
        out_specs=pl.BlockSpec((bt, 1, 256), lambda b: (b, 0, 0)),
        compiler_params=pltpu.CompilerParams(
            dimension_semantics=("parallel",),
            vmem_limit_bytes=vmem_limit,
        ),
        cost_estimate=pl.CostEstimate(
            flops=flops,
            transcendentals=B * (64 + 128 + 256),
            bytes_accessed=bytes_accessed,
        ),
    )(a1, w2b, w3b)
    return out.reshape(B, 256)


def pointnetfeat_reference(x_ncw, params):
    """Pure-JAX f32 reference matching the PyTorch module (biases included)."""
    w1, b1, w2, b2, w3, b3 = params
    h = jnp.transpose(x_ncw, (0, 2, 1)).astype(jnp.float32)   # (B, N, 3)

    def inorm(a):
        m = jnp.mean(a, axis=1, keepdims=True)
        v = jnp.mean((a - m) ** 2, axis=1, keepdims=True)
        return (a - m) / jnp.sqrt(v + EPS)

    h = jax.nn.relu(inorm(jnp.einsum("bnc,cd->bnd", h, w1) + b1))
    h = jax.nn.relu(inorm(jnp.einsum("bnc,cd->bnd", h, w2) + b2))
    h = inorm(jnp.einsum("bnc,cd->bnd", h, w3) + b3)
    return jnp.max(h, axis=1)


def init_params(key):
    """Deterministic init mimicking Conv1d default (uniform +-1/sqrt(fan_in)).

    Weights stored as (C_in, C_out) so the kernel can do x @ W directly
    (PyTorch Conv1d weight is (C_out, C_in, 1) -> squeeze + transpose)."""
    def conv_init(k, c_in, c_out):
        kw, kb = jax.random.split(k)
        bound = 1.0 / jnp.sqrt(float(c_in))
        w = jax.random.uniform(kw, (c_in, c_out), jnp.float32, -bound, bound)
        b = jax.random.uniform(kb, (1, c_out), jnp.float32, -bound, bound)
        return w, b

    k1, k2, k3 = jax.random.split(key, 3)
    w1, b1 = conv_init(k1, 3, 64)
    w2, b2 = conv_init(k2, 64, 128)
    w3, b3 = conv_init(k3, 128, 256)
    return (w1, b1, w2, b2, w3, b3)


if __name__ == "__main__":
    key = jax.random.PRNGKey(0)
    kx, kp = jax.random.split(key)

    B, C, N = 2, 3, 16           # small shapes consistent with (B, 3, n_pts)
    x = jax.random.normal(kx, (B, C, N), dtype=jnp.float32)
    params = init_params(kp)

    out = jax.block_until_ready(pointnetfeat(x, params))
    assert out.shape == (B, 256), out.shape
    assert bool(jnp.all(jnp.isfinite(out)))

    # Relative check against the f32 reference (bf16 MXU + bf16 activations).
    ref = jax.block_until_ready(pointnetfeat_reference(x, params))
    max_err = float(jnp.max(jnp.abs(out - ref)))
    ref_scale = float(jnp.max(jnp.abs(ref)))
    assert max_err <= 0.05 * ref_scale + 0.03, (
        f"max |err| vs f32 reference too large: {max_err} (ref scale {ref_scale})")

    print("KERNEL_OK")
</pallas_src>

<mosaic_0001>
module attributes {stable_mosaic.version = 11 : i64} {
  func.func @pointnetfeat_kernel(%arg0: i32, %arg1: memref<2x16x64xbf16, #tpu.memory_space<vmem>>, %arg2: memref<64x128xbf16, #tpu.memory_space<vmem>>, %arg3: memref<128x256xbf16, #tpu.memory_space<vmem>>, %arg4: memref<2x1x256xf32, #tpu.memory_space<vmem>>) attributes {dimension_semantics = [#tpu.dimension_semantics<parallel>], iteration_bounds = array<i64: 1>, scalar_prefetch = 0 : i64, scratch_operands = 0 : i64, tpu.core_type = #tpu.core_type<tc>, window_params = [{transform_indices = @transform_0, window_bounds = array<i64: 2, 16, 64>}, {pipeline_mode = #tpu.pipeline_mode<synchronous>, transform_indices = @transform_1, window_bounds = array<i64: 64, 128>}, {pipeline_mode = #tpu.pipeline_mode<synchronous>, transform_indices = @transform_2, window_bounds = array<i64: 128, 256>}, {transform_indices = @transform_3, window_bounds = array<i64: 2, 1, 256>}]} {
    %c0 = arith.constant 0 : index
    %c0_0 = arith.constant 0 : index
    %0 = vector.load %arg2[%c0, %c0_0] : memref<64x128xbf16, #tpu.memory_space<vmem>>, vector<64x128xbf16>
    %c0_1 = arith.constant 0 : index
    %c0_2 = arith.constant 0 : index
    %1 = vector.load %arg3[%c0_1, %c0_2] : memref<128x256xbf16, #tpu.memory_space<vmem>>, vector<128x256xbf16>
    %c0_3 = arith.constant 0 : index
    %c0_4 = arith.constant 0 : index
    %c0_5 = arith.constant 0 : index
    %2 = vector.load %arg1[%c0_3, %c0_4, %c0_5] : memref<2x16x64xbf16, #tpu.memory_space<vmem>>, vector<2x16x64xbf16>
    %3 = arith.extf %2 : vector<2x16x64xbf16> to vector<2x16x64xf32>
    %cst = arith.constant dense<0.000000e+00> : vector<2x64xf32>
    %4 = vector.multi_reduction <add>, %3, %cst [1] : vector<2x16x64xf32> to vector<2x64xf32>
    %5 = vector.shape_cast %4 : vector<2x64xf32> to vector<2x1x64xf32>
    %cst_6 = arith.constant 6.250000e-02 : f32
    %6 = vector.broadcast %cst_6 : f32 to vector<2x1x64xf32>
    %7 = arith.mulf %5, %6 : vector<2x1x64xf32>
    %8 = vector.broadcast %7 : vector<2x1x64xf32> to vector<2x16x64xf32>
    %9 = arith.subf %3, %8 : vector<2x16x64xf32>
    %10 = arith.mulf %9, %9 : vector<2x16x64xf32>
    %cst_7 = arith.constant dense<0.000000e+00> : vector<2x64xf32>
    %11 = vector.multi_reduction <add>, %10, %cst_7 [1] : vector<2x16x64xf32> to vector<2x64xf32>
    %12 = vector.shape_cast %11 : vector<2x64xf32> to vector<2x1x64xf32>
    %cst_8 = arith.constant 6.250000e-02 : f32
    %13 = vector.broadcast %cst_8 : f32 to vector<2x1x64xf32>
    %14 = arith.mulf %12, %13 : vector<2x1x64xf32>
    %cst_9 = arith.constant 9.99999974E-6 : f32
    %15 = vector.broadcast %cst_9 : f32 to vector<2x1x64xf32>
    %16 = arith.addf %14, %15 : vector<2x1x64xf32>
    %17 = math.rsqrt %16 : vector<2x1x64xf32>
    %18 = vector.broadcast %17 : vector<2x1x64xf32> to vector<2x16x64xf32>
    %19 = arith.mulf %9, %18 : vector<2x16x64xf32>
    %cst_10 = arith.constant 0.000000e+00 : f32
    %20 = vector.broadcast %cst_10 : f32 to vector<2x16x64xf32>
    %21 = arith.maximumf %19, %20 : vector<2x16x64xf32>
    %22 = arith.truncf %21 : vector<2x16x64xf32> to vector<2x16x64xbf16>
    %cst_11 = arith.constant dense<0.000000e+00> : vector<2x64xf32>
    %23 = vector.multi_reduction <add>, %21, %cst_11 [1] : vector<2x16x64xf32> to vector<2x64xf32>
    %cst_12 = arith.constant 6.250000e-02 : f32
    %24 = vector.broadcast %cst_12 : f32 to vector<2x64xf32>
    %25 = arith.mulf %23, %24 : vector<2x64xf32>
    %26 = vector.shape_cast %22 : vector<2x16x64xbf16> to vector<32x64xbf16>
    %cst_13 = arith.constant dense<0.000000e+00> : vector<32x128xf32>
    %27 = tpu.matmul %26, %0, %cst_13 {dimension_numbers = #tpu.dot_dimension_numbers<[1], [0], [0], [1], [0, 0, 1, 1], [], []>} : vector<32x64xbf16>, vector<64x128xbf16>, vector<32x128xf32> -> vector<32x128xf32>
    %28 = vector.shape_cast %27 : vector<32x128xf32> to vector<2x16x128xf32>
    %29 = arith.truncf %25 : vector<2x64xf32> to vector<2x64xbf16>
    %cst_14 = arith.constant dense<0.000000e+00> : vector<2x128xf32>
    %30 = tpu.matmul %29, %0, %cst_14 {dimension_numbers = #tpu.dot_dimension_numbers<[1], [0], [0], [1], [0, 0, 1, 1], [], []>} : vector<2x64xbf16>, vector<64x128xbf16>, vector<2x128xf32> -> vector<2x128xf32>
    %31 = vector.shape_cast %30 : vector<2x128xf32> to vector<2x1x128xf32>
    %32 = vector.broadcast %31 : vector<2x1x128xf32> to vector<2x16x128xf32>
    %33 = arith.subf %28, %32 : vector<2x16x128xf32>
    %34 = arith.mulf %33, %33 : vector<2x16x128xf32>
    %cst_15 = arith.constant dense<0.000000e+00> : vector<2x128xf32>
    %35 = vector.multi_reduction <add>, %34, %cst_15 [1] : vector<2x16x128xf32> to vector<2x128xf32>
    %36 = vector.shape_cast %35 : vector<2x128xf32> to vector<2x1x128xf32>
    %cst_16 = arith.constant 6.250000e-02 : f32
    %37 = vector.broadcast %cst_16 : f32 to vector<2x1x128xf32>
    %38 = arith.mulf %36, %37 : vector<2x1x128xf32>
    %cst_17 = arith.constant 9.99999974E-6 : f32
    %39 = vector.broadcast %cst_17 : f32 to vector<2x1x128xf32>
    %40 = arith.addf %38, %39 : vector<2x1x128xf32>
    %41 = math.rsqrt %40 : vector<2x1x128xf32>
    %42 = vector.broadcast %41 : vector<2x1x128xf32> to vector<2x16x128xf32>
    %43 = arith.mulf %33, %42 : vector<2x16x128xf32>
    %cst_18 = arith.constant 0.000000e+00 : f32
    %44 = vector.broadcast %cst_18 : f32 to vector<2x16x128xf32>
    %45 = arith.maximumf %43, %44 : vector<2x16x128xf32>
    %46 = arith.truncf %45 : vector<2x16x128xf32> to vector<2x16x128xbf16>
    %cst_19 = arith.constant dense<0.000000e+00> : vector<2x128xf32>
    %47 = vector.multi_reduction <add>, %45, %cst_19 [1] : vector<2x16x128xf32> to vector<2x128xf32>
    %cst_20 = arith.constant 6.250000e-02 : f32
    %48 = vector.broadcast %cst_20 : f32 to vector<2x128xf32>
    %49 = arith.mulf %47, %48 : vector<2x128xf32>
    %50 = vector.shape_cast %46 : vector<2x16x128xbf16> to vector<32x128xbf16>
    %cst_21 = arith.constant dense<0.000000e+00> : vector<32x256xf32>
    %51 = tpu.matmul %50, %1, %cst_21 {dimension_numbers = #tpu.dot_dimension_numbers<[1], [0], [0], [1], [0, 0, 1, 1], [], []>} : vector<32x128xbf16>, vector<128x256xbf16>, vector<32x256xf32> -> vector<32x256xf32>
    %52 = vector.shape_cast %51 : vector<32x256xf32> to vector<2x16x256xf32>
    %53 = arith.truncf %49 : vector<2x128xf32> to vector<2x128xbf16>
    %cst_22 = arith.constant dense<0.000000e+00> : vector<2x256xf32>
    %54 = tpu.matmul %53, %1, %cst_22 {dimension_numbers = #tpu.dot_dimension_numbers<[1], [0], [0], [1], [0, 0, 1, 1], [], []>} : vector<2x128xbf16>, vector<128x256xbf16>, vector<2x256xf32> -> vector<2x256xf32>
    %55 = vector.shape_cast %54 : vector<2x256xf32> to vector<2x1x256xf32>
    %cst_23 = arith.constant dense<0xFF800000> : vector<2x256xf32>
    %56 = vector.multi_reduction <maximumf>, %52, %cst_23 [1] : vector<2x16x256xf32> to vector<2x256xf32>
    %57 = vector.shape_cast %56 : vector<2x256xf32> to vector<2x1x256xf32>
    %58 = arith.mulf %52, %52 : vector<2x16x256xf32>
    %cst_24 = arith.constant dense<0.000000e+00> : vector<2x256xf32>
    %59 = vector.multi_reduction <add>, %58, %cst_24 [1] : vector<2x16x256xf32> to vector<2x256xf32>
    %60 = vector.shape_cast %59 : vector<2x256xf32> to vector<2x1x256xf32>
    %cst_25 = arith.constant 6.250000e-02 : f32
    %61 = vector.broadcast %cst_25 : f32 to vector<2x1x256xf32>
    %62 = arith.mulf %60, %61 : vector<2x1x256xf32>
    %63 = arith.mulf %55, %55 : vector<2x1x256xf32>
    %64 = arith.subf %62, %63 : vector<2x1x256xf32>
    %cst_26 = arith.constant 0.000000e+00 : f32
    %65 = vector.broadcast %cst_26 : f32 to vector<2x1x256xf32>
    %66 = arith.maximumf %64, %65 : vector<2x1x256xf32>
    %67 = arith.subf %57, %55 : vector<2x1x256xf32>
    %cst_27 = arith.constant 9.99999974E-6 : f32
    %68 = vector.broadcast %cst_27 : f32 to vector<2x1x256xf32>
    %69 = arith.addf %66, %68 : vector<2x1x256xf32>
    %70 = math.rsqrt %69 : vector<2x1x256xf32>
    %71 = arith.mulf %67, %70 : vector<2x1x256xf32>
    %c0_28 = arith.constant 0 : index
    %c0_29 = arith.constant 0 : index
    %c0_30 = arith.constant 0 : index
    %72 = vector.load %arg4[%c0_28, %c0_29, %c0_30] : memref<2x1x256xf32, #tpu.memory_space<vmem>>, vector<2x1x256xf32>
    tpu.vector_store %arg4[%c0_28, %c0_29, %c0_30], %71 {strides = array<i32>} : memref<2x1x256xf32, #tpu.memory_space<vmem>>, vector<2x1x256xf32>,
    return
  }
  func.func @transform_0(%arg0: i32) -> (i32, i32, i32) {
    %c0_i32 = arith.constant 0 : i32
    %c0_i32_0 = arith.constant 0 : i32
    %c0_i32_1 = arith.constant 0 : i32
    return %arg0, %c0_i32, %c0_i32_0 : i32, i32, i32
  }
  func.func @transform_1(%arg0: i32) -> (i32, i32) {
    %c0_i32 = arith.constant 0 : i32
    %c0_i32_0 = arith.constant 0 : i32
    %c0_i32_1 = arith.constant 0 : i32
    return %c0_i32, %c0_i32_0 : i32, i32
  }
  func.func @transform_2(%arg0: i32) -> (i32, i32) {
    %c0_i32 = arith.constant 0 : i32
    %c0_i32_0 = arith.constant 0 : i32
    %c0_i32_1 = arith.constant 0 : i32
    return %c0_i32, %c0_i32_0 : i32, i32
  }
  func.func @transform_3(%arg0: i32) -> (i32, i32, i32) {
    %c0_i32 = arith.constant 0 : i32
    %c0_i32_0 = arith.constant 0 : i32
    %c0_i32_1 = arith.constant 0 : i32
    return %arg0, %c0_i32, %c0_i32_0 : i32, i32, i32
  }
}

</mosaic_0001>

<bundles_post_ra>
// kernel: tpu_custom_call.1
= control target key start
LH: loop header
LB: loop body
LE: loop exit
PB: predicated region body
PF: predicated region fallthrough
CT: control target
= control target key end

     0   :  { %8 = vsyncpa [#allocation3], 0  ;;  %s1074_s0 = inlined_call_operand.hbm [shape: bf16[2,16,64], index: 0, kind: input, shape index: {}]   ;;  %s1075_s1 = inlined_call_operand.hbm [shape: bf16[64,128], index: 1, kind: input, shape index: {}]   ;;  %s1076_s2 = inlined_call_operand.hbm [shape: bf16[128,256], index: 2, kind: input, shape index: {}]   ;;  %s1077_s3 = inlined_call_operand.hbm [shape: f32[2,1,256], index: 3, kind: output, shape index: {}]  }
   0x1   :  { %9 = vsyncpa [#allocation6], 0 }
   0x2   :  { %10 = vsyncpa [#allocation4], 0  ;;  %s28_s14 = sshll.u32 %s1075_s1, 4  ;;  %s960_s15 = smov [#allocation5]   ;;  %s29_s14 = int_to_ptr.hbm [resolvable:$true] %s28_s14 }
   0x3   :  { %s30_s16 = sshll.u32 %s960_s15, 4  ;;  %s15_s19 = sshll.u32 %s1074_s0, 4  ;;  %s31_s16 = int_to_ptr.vmem [resolvable:$true] %s30_s16  ;;  %s16_s19 = int_to_ptr.hbm [resolvable:$true] %s15_s19 }
   0x4   :  { %s961_s20 = smov 64   ;;  %s962_s21 = smov 4  }
   0x5   :  { %36 = dma.hbm_to_vmem [thread:$0]  %s29_s14, 512, %s31_s16, [#allocation6], %s961_s20, %s961_s20, %s962_s21  }
   0x6   :  { %s963_s22 = smov [#allocation2]   ;;  %s41_s26 = sshll.u32 %s1076_s2, 4  ;;  %s42_s26 = int_to_ptr.hbm [resolvable:$true] %s41_s26 }
   0x7   :  { %s17_s23 = sshll.u32 %s963_s22, 4  ;;  %s964_s1 = smov [#allocation7]   ;;  %s18_s23 = int_to_ptr.vmem [resolvable:$true] %s17_s23 }
   0x8   :  { %23 = dma.hbm_to_vmem [thread:$0]  %s16_s19, 256, %s18_s23, [#allocation3], %s961_s20, %s961_s20, %s962_s21  }
   0x9   :  { %s43_s27 = sshll.u32 %s964_s1, 4  ;;  %s965_s28 = smov 128   ;;  %s44_s27 = int_to_ptr.vmem [resolvable:$true] %s43_s27 }
   0xa   :  { %s966_s29 = smov 8  }
   0xb   :  { %49 = dma.hbm_to_vmem [thread:$0]  %s42_s26, 2048, %s44_s27, [#allocation6], %s965_s28, %s965_s28, %s966_s29  }
   0xc   :  { %954 = dma.done.wait [#allocation3], 256  }
   0xd   :  { %955 = vsyncadd [#allocation3], 4294967040 }
   0xe   :  { %956 = dma.done.wait [#allocation6], 2560  }
   0xf   :  { %957 = vsyncadd [#allocation6], 4294964736  ;;  %v806_v0 = vld [vmem:[#allocation5 + $0x18] sm:$0xff]  ;;  %v824_v1 = vld [vmem:[#allocation2] sm:$0xff]   ;;  %vm95_vm0 = vcmask 523264   ;;  %vm263_vm7 = vcmask 1041409  }
  0x10   :  { %v831_v2 = vld [vmem:[#allocation2 + $0x8] sm:$0xff]   ;;  %242 = vmatpush.bf16.msra.mxu0 %v806_v0  ;;  %v805_v3 = vld [vmem:[#allocation5 + $0x10] sm:$0xff]  ;;  %v825_v4 = vunpack.c.l.bf16 %v824_v1  ;;  %v826_v5 = vunpack.c.h.bf16 %v824_v1  ;;  %273 = vmatpush.bf16.msra.mxu1 %v806_v0  ;;  %v804_v14 = vld [vmem:[#allocation5 + $0x8] sm:$0xff]  ;;  %vm530_vm14 = vcmask 1040384   ;;  %s967_s0 = smov [#allocation8]   ;;  %s706_s5 = sshll.u32 %s1077_s3, 4  ;;  %s707_s5 = int_to_ptr.hbm [resolvable:$true] %s706_s5 }
  0x11   :  { %v829_v6 = vunpack.c.l.bf16 %v831_v2  ;;  %v830_v7 = vunpack.c.h.bf16 %v831_v2  ;;  %v803_v19 = vld [vmem:[#allocation5] sm:$0xff]  ;;  %s704_s2 = sshll.u32 %s967_s0, 4  ;;  %s968_s6 = smov 32   ;;  %s705_s2 = int_to_ptr.vmem [resolvable:$true] %s704_s2 }
  0x12   :  { %v96_v8 = vsel %vm95_vm0, %v825_v4, 0.0  ;;  %v97_v9 = vsel %vm95_vm0, %v826_v5, 0.0  ;;  %s969_s7 = smov 2  }
  0x13   :  { %v105_v10 = vsel %vm95_vm0, %v829_v6, 0.0  ;;  %v106_v11 = vsel %vm95_vm0, %v830_v7, 0.0  ;;  %v98_v12 = vadd.f32 %v97_v9, %v96_v8 }
  0x14   :  { %v107_v13 = vadd.f32 %v106_v11, %v105_v10  ;;  %243 = vmatpush.bf16.msra.mxu0 %v805_v3  ;;  %274 = vmatpush.bf16.msra.mxu1 %v805_v3 }
  0x15   :  { %v99_v15 = vrot.slane %v98_v12, 4 }
  0x16   :  { %v108_v16 = vrot.slane %v107_v13, 4 }
  0x17   :  { %v100_v17 = vadd.f32 %v99_v15, %v98_v12 }
  0x18   :  { %v109_v18 = vadd.f32 %v108_v16, %v107_v13  ;;  %244 = vmatpush.bf16.msra.mxu0 %v804_v14  ;;  %275 = vmatpush.bf16.msra.mxu1 %v804_v14 }
  0x19   :  { %v101_v20 = vrot.slane %v100_v17, 2 }
  0x1a   :  { %v110_v21 = vrot.slane %v109_v18, 2 }
  0x1b   :  { %v102_v22 = vadd.f32 %v101_v20, %v100_v17 }
  0x1c   :  { %v111_v23 = vadd.f32 %v110_v21, %v109_v18  ;;  %245 = vmatpush.bf16.msra.mxu0 %v803_v19  ;;  %276 = vmatpush.bf16.msra.mxu1 %v803_v19 }
  0x1d   :  { %v103_v24 = vrot.slane %v102_v22, 1 }
  0x1e   :  { %v112_v25 = vrot.slane %v111_v23, 1 }
  0x1f   :  { %v104_v26 = vadd.f32 %v103_v24, %v102_v22 }
  0x20   :  { %v113_v27 = vadd.f32 %v112_v25, %v111_v23 }
  0x21   :  { %v114_v28 = vmul.f32 0.0625, %v104_v26 }
  0x22   :  { %v115_v29 = vmul.f32 0.0625, %v113_v27 }
  0x23   :  { %v116_v30 = vsub.f32 %v825_v4, %v114_v28  ;;  %v117_v31 = vsub.f32 %v826_v5, %v114_v28 }
  0x24   :  { %v118_v32 = vsub.f32 %v829_v6, %v115_v29  ;;  %v119_v33 = vsub.f32 %v830_v7, %v115_v29 }
  0x25   :  { %v120_v34 = vmul.f32 %v116_v30, %v116_v30  ;;  %v121_v35 = vmul.f32 %v117_v31, %v117_v31 }
  0x26   :  { %v122_v36 = vmul.f32 %v118_v32, %v118_v32  ;;  %v123_v37 = vmul.f32 %v119_v33, %v119_v33 }
  0x27   :  { %v124_v38 = vsel %vm95_vm0, %v120_v34, 0.0  ;;  %v125_v39 = vsel %vm95_vm0, %v121_v35, 0.0 }
  0x28   :  { %v133_v40 = vsel %vm95_vm0, %v122_v36, 0.0  ;;  %v134_v41 = vsel %vm95_vm0, %v123_v37, 0.0  ;;  %v126_v42 = vadd.f32 %v125_v39, %v124_v38 }
  0x29   :  { %v135_v43 = vadd.f32 %v134_v41, %v133_v40 }
  0x2a   :  { %v127_v44 = vrot.slane %v126_v42, 4 }
  0x2b   :  { %v136_v45 = vrot.slane %v135_v43, 4 }
  0x2c   :  { %v128_v46 = vadd.f32 %v127_v44, %v126_v42 }
  0x2d   :  { %v137_v47 = vadd.f32 %v136_v45, %v135_v43 }
  0x2e   :  { %v129_v48 = vrot.slane %v128_v46, 2 }
  0x2f   :  { %v138_v49 = vrot.slane %v137_v47, 2 }
  0x30   :  { %v130_v50 = vadd.f32 %v129_v48, %v128_v46 }
  0x31   :  { %v139_v51 = vadd.f32 %v138_v49, %v137_v47 }
  0x32   :  { %v131_v52 = vrot.slane %v130_v50, 1 }
  0x33   :  { %v140_v53 = vrot.slane %v139_v51, 1 }
  0x34   :  { %v132_v54 = vadd.f32 %v131_v52, %v130_v50 }
  0x35   :  { %v141_v55 = vadd.f32 %v140_v53, %v139_v51 }
  0x36   :  { %v142_v56 = vmul.f32 0.0625, %v132_v54 }
  0x37   :  { %v143_v57 = vmul.f32 0.0625, %v141_v55  ;;  %v797_v55 = vld [vmem:[#allocation7 + $0x70] sm:$0xf] }
  0x38   :  { %v144_v58 = vadd.f32 1e-05, %v142_v56  ;;  %v822_v56 = vld [vmem:[#allocation7 + $0x74] sm:$0xf0] }
  0x39   :  { %v145_v59 = vadd.f32 1e-05, %v143_v57  ;;  %v821_v57 = vld [vmem:[#allocation7 + $0x74] sm:$0xf] }
  0x3a   :  { %842 = vrsqrt.f32 %v144_v58  ;;  %vm152_vm1 = vweird.f32 %v144_v58 }
  0x3b   :  { %844 = vrsqrt.f32 %v145_v59  ;;  %vm162_vm3 = vweird.f32 %v145_v59 }
  0x40   :  { %v843_v60 = vpop.eup %842 }
  0x41   :  { %v845_v61 = vpop.eup %844  ;;  %v147_v62 = vmul.f32 %v843_v60, %v144_v58  ;;  %vm153_vm2 = vweird.f32 %v843_v60 }
  0x42   :  { %v157_v63 = vmul.f32 %v845_v61, %v145_v59  ;;  %vm163_vm4 = vweird.f32 %v845_v61  ;;  %vm154_vm5 = vmor %vm152_vm1, %vm153_vm2  ;;  %v798_v59 = vor.u32 %v822_v56, %v797_v55 }
  0x43   :  { %v148_v0 = vmul.f32 %v843_v60, %v147_v62  ;;  %vm164_vm6 = vmor %vm162_vm3, %vm163_vm4  ;;  %v789_v62 = vld [vmem:[#allocation7 + $0x60] sm:$0xf] }
  0x44   :  { %v158_v1 = vmul.f32 %v845_v61, %v157_v63  ;;  %454 = vmatpush.bf16.msra.mxu2 %v798_v59  ;;  %501 = vmatpush.bf16.msrb.mxu0 %v798_v59  ;;  %v820_v63 = vld [vmem:[#allocation7 + $0x64] sm:$0xf0] }
  0x45   :  { %v149_v2 = vmul.f32 0.5, %v148_v0  ;;  %v819_v0 = vld [vmem:[#allocation7 + $0x64] sm:$0xf]  ;;  %v808_v59 = vld [vmem:[#allocation7 + $0x4] sm:$0xf0] }
  0x46   :  { %v159_v3 = vmul.f32 0.5, %v158_v1  ;;  %v790_v1 = vor.u32 %v820_v63, %v789_v62  ;;  %v743_v62 = vld [vmem:[#allocation7 + $0x8] sm:$0xf0] }
  0x47   :  { %v150_v4 = vsub.f32 1.5, %v149_v2  ;;  %v791_v2 = vld [vmem:[#allocation7 + $0x68] sm:$0xf0] }
  0x48   :  { %v160_v5 = vsub.f32 1.5, %v159_v3  ;;  %v794_v3 = vor.u32 %v819_v0, %v791_v2  ;;  %455 = vmatpush.bf16.msra.mxu2 %v790_v1  ;;  %502 = vmatpush.bf16.msrb.mxu0 %v790_v1 }
  0x49   :  { %v151_v6 = vmul.f32 %v843_v60, %v150_v4  ;;  %v781_v4 = vld [vmem:[#allocation7 + $0x50] sm:$0xf] }
  0x4a   :  { %v161_v7 = vmul.f32 %v845_v61, %v160_v5  ;;  %v818_v5 = vld [vmem:[#allocation7 + $0x54] sm:$0xf0] }
  0x4b   :  { %v155_v8 = vsel %vm154_vm5, %v843_v60, %v151_v6  ;;  %v799_v60 = vld [vmem:[#allocation7 + $0x78] sm:$0xf0]  ;;  %v817_v6 = vld [vmem:[#allocation7 + $0x54] sm:$0xf] }
  0x4c   :  { %v166_v9 = vmul.f32 %v155_v8, %v116_v30  ;;  %v167_v10 = vmul.f32 %v155_v8, %v117_v31  ;;  %v165_v11 = vsel %vm164_vm6, %v845_v61, %v161_v7  ;;  %v802_v61 = vor.u32 %v821_v57, %v799_v60 }
  0x4d   :  { %v168_v12 = vmul.f32 %v165_v11, %v118_v32  ;;  %v169_v13 = vmul.f32 %v165_v11, %v119_v33  ;;  %v782_v8 = vor.u32 %v818_v5, %v781_v4  ;;  %v773_v11 = vld [vmem:[#allocation7 + $0x40] sm:$0xf] }
  0x4e   :  { %v170_v14 = vmax.f32 %v166_v9, 0.0  ;;  %v171_v15 = vmax.f32 %v167_v10, 0.0  ;;  %473 = vmatpush.bf16.msra.mxu3 %v802_v61  ;;  %514 = vmatpush.bf16.msrb.mxu1 %v802_v61  ;;  %v783_v9 = vld [vmem:[#allocation7 + $0x58] sm:$0xf0]  ;;  %v807_v61 = vld [vmem:[#allocation7 + $0x4] sm:$0xf] }
  0x4f   :  { %v172_v16 = vmax.f32 %v168_v12, 0.0  ;;  %v173_v17 = vmax.f32 %v169_v13, 0.0  ;;  %v786_v10 = vor.u32 %v817_v6, %v783_v9  ;;  %456 = vmatpush.bf16.msra.mxu2 %v782_v8  ;;  %503 = vmatpush.bf16.msrb.mxu0 %v782_v8  ;;  %v816_v12 = vld [vmem:[#allocation7 + $0x44] sm:$0xf0]  ;;  %v815_v13 = vld [vmem:[#allocation7 + $0x44] sm:$0xf]  ;;  %v746_v1 = vor.u32 %v807_v61, %v743_v62 }
  0x50   :  { %v174_v18 = vpack.c.bf16 %v170_v14, %v170_v14  ;;  %v175_v19 = vpack.c.bf16 %v171_v15, %v171_v15  ;;  %v178_v20 = vsel %vm95_vm0, %v170_v14, 0.0  ;;  %v179_v21 = vsel %vm95_vm0, %v171_v15, 0.0 }
  0x51   :  { %v180_v22 = vadd.f32 %v179_v21, %v178_v20  ;;  %v187_v23 = vsel %vm95_vm0, %v172_v16, 0.0  ;;  %v188_v26 = vsel %vm95_vm0, %v173_v17, 0.0  ;;  %v176_v36 = vpack.c.bf16 %v172_v16, %v172_v16  ;;  %v775_v16 = vld [vmem:[#allocation7 + $0x48] sm:$0xf0] }
  0x52   :  { %v202_v24 = vunpack.c.l.b16 %v174_v18  ;;  %v203_v25 = vunpack.c.l.b16 %v175_v19  ;;  %v189_v28 = vadd.f32 %v188_v26, %v187_v23  ;;  %v177_v37 = vpack.c.bf16 %v173_v17, %v173_v17  ;;  %474 = vmatpush.bf16.msra.mxu3 %v794_v3  ;;  %515 = vmatpush.bf16.msrb.mxu1 %v794_v3  ;;  %v765_v23 = vld [vmem:[#allocation7 + $0x30] sm:$0xf] }
  0x53   :  { %v181_v27 = vrot.slane %v180_v22, 4  ;;  %v204_v42 = vunpack.c.l.b16 %v176_v36  ;;  %v774_v15 = vor.u32 %v816_v12, %v773_v11  ;;  %v778_v19 = vor.u32 %v815_v13, %v775_v16 }
  0x54   :  { %v206_v29 = vpack.c.b16 %v203_v25, %v202_v24  ;;  %v190_v31 = vrot.slane %v189_v28, 4  ;;  %v205_v43 = vunpack.c.l.b16 %v177_v37  ;;  %v814_v24 = vld [vmem:[#allocation7 + $0x34] sm:$0xf0]  ;;  %v757_v37 = vld [vmem:[#allocation7 + $0x20] sm:$0xf] }
  0x55   :  { %v182_v30 = vadd.f32 %v181_v27, %v180_v22  ;;  %457 = vmatpush.bf16.msra.mxu2 %v774_v15  ;;  %504 = vmatpush.bf16.msrb.mxu0 %v774_v15  ;;  %v766_v26 = vor.u32 %v814_v24, %v765_v23  ;;  %v813_v27 = vld [vmem:[#allocation7 + $0x34] sm:$0xf] }
  0x56   :  { %736 = vmatmul.msk.bf16.vlgmr.msra.gmra.mxu0 %vm95_vm0, %v206_v29  ;;  %v191_v32 = vadd.f32 %v190_v31, %v189_v28  ;;  %v207_v48 = vpack.c.b16 %v205_v43, %v204_v42  ;;  %475 = vmatpush.bf16.msra.mxu3 %v786_v10  ;;  %v767_v28 = vld [vmem:[#allocation7 + $0x38] sm:$0xf0]  ;;  %v759_v42 = vld [vmem:[#allocation7 + $0x28] sm:$0xf0] }
  0x57   :  { %v183_v33 = vrot.slane %v182_v30, 2  ;;  %516 = vmatpush.bf16.msrb.mxu1 %v786_v10 }
  0x58   :  { %v192_v35 = vrot.slane %v191_v32, 2 }
  0x59   :  { %v184_v34 = vadd.f32 %v183_v33, %v182_v30  ;;  %458 = vmatpush.bf16.msra.mxu2 %v766_v26  ;;  %v770_v33 = vor.u32 %v813_v27, %v767_v28  ;;  %505 = vmatpush.bf16.msrb.mxu0 %v766_v26 }
  0x5a   :  { %v193_v39 = vadd.f32 %v192_v35, %v191_v32  ;;  %476 = vmatpush.bf16.msra.mxu3 %v778_v19 }
  0x5b   :  { %v185_v38 = vrot.slane %v184_v34, 1  ;;  %517 = vmatpush.bf16.msrb.mxu1 %v778_v19 }
  0x5c   :  { %v194_v41 = vrot.slane %v193_v39, 1 }
  0x5d   :  { %v186_v40 = vadd.f32 %v185_v38, %v184_v34  ;;  %v812_v38 = vld [vmem:[#allocation7 + $0x24] sm:$0xf0] }
  0x5e   :  { %v195_v44 = vadd.f32 %v194_v41, %v193_v39  ;;  %v811_v39 = vld [vmem:[#allocation7 + $0x24] sm:$0xf]  ;;  %477 = vmatpush.bf16.msra.mxu3 %v770_v33  ;;  %v758_v41 = vor.u32 %v812_v38, %v757_v37 }
  0x5f   :  { %v196_v45 = vmul.f32 0.0625, %v186_v40  ;;  %518 = vmatpush.bf16.msrb.mxu1 %v770_v33 }
  0x60   :  { %v197_v46 = vmul.f32 0.0625, %v195_v44  ;;  %459 = vmatpush.bf16.msra.mxu2 %v758_v41  ;;  %506 = vmatpush.bf16.msrb.mxu0 %v758_v41 }
  0x61   :  { %v257_v47 = vpack.c.bf16 %v196_v45, %v196_v45  ;;  %v762_v45 = vor.u32 %v811_v39, %v759_v42 }
  0x62   :  { %v258_v49 = vpack.c.bf16 %v197_v46, %v197_v46 }
  0x63   :  { %v261_v50 = vunpack.c.l.b16 %v257_v47  ;;  %478 = vmatpush.bf16.msra.mxu3 %v762_v45  ;;  %519 = vmatpush.bf16.msrb.mxu1 %v762_v45 }
  0x64   :  { %v262_v51 = vunpack.c.l.b16 %v258_v49  ;;  %v810_v49 = vld [vmem:[#allocation7 + $0x14] sm:$0xf0] }
  0x66   :  { %737 = vmatmul.msk.bf16.gmra.mxu0 %vm95_vm0, %v207_v48  ;;  %v264_v52 = vsel %vm263_vm7, %v262_v51, %v261_v50  ;;  %v749_v48 = vld [vmem:[#allocation7 + $0x10] sm:$0xf]  ;;  %v809_v51 = vld [vmem:[#allocation7 + $0x14] sm:$0xf] }
  0x67   :  { %v265_v53 = vpack.c.b16 %v264_v52, %v264_v52  ;;  %v750_v50 = vor.u32 %v810_v49, %v749_v48  ;;  %v751_v52 = vld [vmem:[#allocation7 + $0x18] sm:$0xf0] }
  0x68   :  { %v754_v55 = vor.u32 %v809_v51, %v751_v52 }
  0x69   :  { %738 = vmatmul.msk.bf16.vlgmr.msra.gmra.mxu1 %vm95_vm0, %v265_v53  ;;  %460 = vmatpush.bf16.msra.mxu2 %v750_v50 }
  0x6a   :  { %507 = vmatpush.bf16.msrb.mxu0 %v750_v50  ;;  %479 = vmatpush.bf16.msra.mxu3 %v754_v55 }
  0x6b   :  { %520 = vmatpush.bf16.msrb.mxu1 %v754_v55 }
  0x6e   :  { %480 = vmatpush.bf16.msra.mxu3 %v746_v1 }
  0x6f   :  { %521 = vmatpush.bf16.msrb.mxu1 %v746_v1 }
  0xd3   :  { %v247_v54 = vpop.f32.mrf.mxu0 }
  0xdb   :  { %v249_v58 = vpop.f32.mrf.mxu0 }
  0xe3   :  { %v252_v7 = vpop.f32.mrf.mxu0 }
  0xe6   :  { %v278_v14 = vpop.f32.mrf.mxu1 }
  0xe7   :  { %v283_v17 = vrot.slane %v278_v14, 1  ;;  %v284_v18 = vperm.slane %v278_v14, 0 }
  0xe9   :  { %v285_v20 = vperm.slane %v283_v17, 0  ;;  %v1015_v21 = vsub.f32 %v247_v54, %v284_v18  ;;  %v1017_v22 = vsub.f32 %v249_v58, %v284_v18  ;;  %v741_v58 = vld [vmem:[#allocation7] sm:$0xf] }
  0xea   :  { %v742_v60 = vor.u32 %v808_v59, %v741_v58 }
  0xeb   :  { %v254_v25 = vpop.f32.mrf.mxu0  ;;  %v1019_v29 = vsub.f32 %v252_v7, %v285_v20  ;;  %v292_v30 = vmul.f32 %v1015_v21, %v1015_v21  ;;  %v293_v31 = vmul.f32 %v1017_v22, %v1017_v22 }
  0xec   :  { %v1025_v32 = vsub.f32 %v254_v25, %v285_v20  ;;  %461 = vmatpush.bf16.msra.mxu2 %v742_v60  ;;  %508 = vmatpush.bf16.msrb.mxu0 %v742_v60 }
  0xed   :  { %v294_v34 = vmul.f32 %v1019_v29, %v1019_v29  ;;  %v296_v35 = vadd.f32 %v293_v31, %v292_v30 }
  0xee   :  { %v295_v36 = vmul.f32 %v1025_v32, %v1025_v32  ;;  %v280_v40 = vpop.f32.mrf.mxu1 }
  0xef   :  { %v297_v43 = vrot.slane %v296_v35, 4 }
  0xf0   :  { %v303_v44 = vadd.f32 %v295_v36, %v294_v34 }
  0xf1   :  { %v298_v46 = vadd.f32 %v297_v43, %v296_v35 }
  0xf2   :  { %v304_v47 = vrot.slane %v303_v44, 4 }
  0xf3   :  { %v299_v53 = vrot.slane %v298_v46, 2 }
  0xf4   :  { %v305_v54 = vadd.f32 %v304_v47, %v303_v44 }
  0xf5   :  { %v300_v56 = vadd.f32 %v299_v53, %v298_v46 }
  0xf6   :  { %v306_v57 = vrot.slane %v305_v54, 2 }
  0xf7   :  { %v301_v63 = vrot.slane %v300_v56, 1 }
  0xf8   :  { %v307_v0 = vadd.f32 %v306_v57, %v305_v54 }
  0xf9   :  { %v302_v2 = vadd.f32 %v301_v63, %v300_v56 }
  0xfa   :  { %v308_v3 = vrot.slane %v307_v0, 1 }
  0xfb   :  { %v310_v4 = vmul.f32 0.0625, %v302_v2 }
  0xfc   :  { %v309_v5 = vadd.f32 %v308_v3, %v307_v0 }
  0xfd   :  { %v312_v6 = vadd.f32 1e-05, %v310_v4 }
  0xfe   :  { %v311_v7 = vmul.f32 0.0625, %v309_v5 }
  0xff   :  { %846 = vrsqrt.f32 %v312_v6  ;;  %vm320_vm9 = vweird.f32 %v312_v6 }
 0x100   :  { %v313_v8 = vadd.f32 1e-05, %v311_v7 }
 0x102   :  { %848 = vrsqrt.f32 %v313_v8  ;;  %vm330_vm12 = vweird.f32 %v313_v8 }
 0x105   :  { %v847_v9 = vpop.eup %846 }
 0x106   :  { %v315_v10 = vmul.f32 %v847_v9, %v312_v6  ;;  %vm321_vm8 = vweird.f32 %v847_v9 }
 0x107   :  { %vm322_vm11 = vmor %vm320_vm9, %vm321_vm8 }
 0x108   :  { %v849_v11 = vpop.eup %848  ;;  %v316_v12 = vmul.f32 %v847_v9, %v315_v10 }
 0x109   :  { %v325_v13 = vmul.f32 %v849_v11, %v313_v8  ;;  %vm331_vm10 = vweird.f32 %v849_v11 }
 0x10a   :  { %v317_v14 = vmul.f32 0.5, %v316_v12  ;;  %vm332_vm13 = vmor %vm330_vm12, %vm331_vm10 }
 0x10b   :  { %v326_v15 = vmul.f32 %v849_v11, %v325_v13 }
 0x10c   :  { %v318_v16 = vsub.f32 1.5, %v317_v14 }
 0x10d   :  { %v327_v17 = vmul.f32 0.5, %v326_v15 }
 0x10e   :  { %v319_v18 = vmul.f32 %v847_v9, %v318_v16 }
 0x10f   :  { %v328_v19 = vsub.f32 1.5, %v327_v17 }
 0x110   :  { %v323_v20 = vsel %vm322_vm11, %v847_v9, %v319_v18 }
 0x111   :  { %v329_v23 = vmul.f32 %v849_v11, %v328_v19  ;;  %v334_v24 = vmul.f32 %v323_v20, %v1015_v21  ;;  %v335_v25 = vmul.f32 %v323_v20, %v1017_v22 }
 0x113   :  { %v333_v26 = vsel %vm332_vm13, %v849_v11, %v329_v23  ;;  %v338_v30 = vmax.f32 %v334_v24, 0.0  ;;  %v339_v31 = vmax.f32 %v335_v25, 0.0 }
 0x114   :  { %v336_v27 = vmul.f32 %v333_v26, %v1019_v29  ;;  %v337_v28 = vmul.f32 %v333_v26, %v1025_v32 }
 0x115   :  { %v342_v35 = vpack.c.bf16 %v338_v30, %v338_v30  ;;  %v343_v36 = vpack.c.bf16 %v339_v31, %v339_v31  ;;  %v346_v37 = vadd.f32 %v339_v31, %v338_v30 }
 0x116   :  { %v340_v33 = vmax.f32 %v336_v27, 0.0  ;;  %v341_v34 = vmax.f32 %v337_v28, 0.0 }
 0x117   :  { %v366_v39 = vunpack.c.l.b16 %v342_v35  ;;  %v367_v40 = vunpack.c.l.b16 %v343_v36  ;;  %v347_v41 = vrot.slane %v346_v37, 4 }
 0x118   :  { %v353_v38 = vadd.f32 %v341_v34, %v340_v33  ;;  %v344_v48 = vpack.c.bf16 %v340_v33, %v340_v33  ;;  %v345_v49 = vpack.c.bf16 %v341_v34, %v341_v34 }
 0x119   :  { %v370_v42 = vpack.c.b16 %v367_v40, %v366_v39  ;;  %v348_v22 = vadd.f32 %v347_v41, %v346_v37 }
 0x11a   :  { %v354_v21 = vrot.slane %v353_v38, 4  ;;  %v368_v53 = vunpack.c.l.b16 %v344_v48  ;;  %v369_v54 = vunpack.c.l.b16 %v345_v49 }
 0x11b   :  { %462 = vmatmul.bf16.vlgmr.msra.gmra.mxu2 %v370_v42  ;;  %481 = vmatmul.bf16.vlgmr.msra.gmra.mxu3 %v370_v42  ;;  %v349_v29 = vrot.slane %v348_v22, 2 }
 0x11c   :  { %v355_v43 = vadd.f32 %v354_v21, %v353_v38  ;;  %v371_v58 = vpack.c.b16 %v369_v54, %v368_v53 }
 0x11d   :  { %v350_v32 = vadd.f32 %v349_v29, %v348_v22 }
 0x11e   :  { %v356_v44 = vrot.slane %v355_v43, 2 }
 0x11f   :  { %v351_v46 = vrot.slane %v350_v32, 1 }
 0x120   :  { %v357_v45 = vadd.f32 %v356_v44, %v355_v43 }
 0x121   :  { %v352_v50 = vadd.f32 %v351_v46, %v350_v32 }
 0x122   :  { %v358_v47 = vrot.slane %v357_v45, 1 }
 0x123   :  { %v360_v52 = vmul.f32 0.0625, %v352_v50 }
 0x124   :  { %v359_v51 = vadd.f32 %v358_v47, %v357_v45 }
 0x125   :  { %v492_v56 = vpack.c.bf16 %v360_v52, %v360_v52 }
 0x126   :  { %v361_v55 = vmul.f32 0.0625, %v359_v51 }
 0x127   :  { %v496_v59 = vunpack.c.l.b16 %v492_v56 }
 0x128   :  { %v493_v57 = vpack.c.bf16 %v361_v55, %v361_v55 }
 0x12a   :  { %v497_v60 = vunpack.c.l.b16 %v493_v57 }
 0x12b   :  { %467 = vmatmul.bf16.gmra.mxu2 %v371_v58  ;;  %486 = vmatmul.bf16.gmra.mxu3 %v371_v58 }
 0x12c   :  { %v498_v61 = vsel %vm263_vm7, %v497_v60, %v496_v59 }
 0x12d   :  { %v499_v62 = vpack.c.b16 %v498_v61, %v498_v61 }
 0x12f   :  { %509 = vmatmul.bf16.vlgmr.msrb.gmra.mxu0 %v499_v62  ;;  %522 = vmatmul.bf16.vlgmr.msrb.gmra.mxu1 %v499_v62 }
 0x19e   :  { %v463_v63 = vpop.f32.mrf.mxu2  ;;  %v482_v0 = vpop.f32.mrf.mxu3 }
 0x19f   :  { %v564_v3 = vmul.f32 %v463_v63, %v463_v63  ;;  %v565_v4 = vmul.f32 %v482_v0, %v482_v0 }
 0x1a6   :  { %v465_v1 = vpop.f32.mrf.mxu2  ;;  %v484_v2 = vpop.f32.mrf.mxu3 }
 0x1a7   :  { %v566_v5 = vmul.f32 %v465_v1, %v465_v1  ;;  %v567_v6 = vmul.f32 %v484_v2, %v484_v2  ;;  %v543_v25 = vmax.f32 %v482_v0, %v484_v2  ;;  %v536_v33 = vmax.f32 %v463_v63, %v465_v1 }
 0x1a9   :  { %v572_v7 = vadd.f32 %v566_v5, %v564_v3  ;;  %v579_v8 = vadd.f32 %v567_v6, %v565_v4  ;;  %v544_v36 = vrot.slane %v543_v25, 4  ;;  %v537_v44 = vrot.slane %v536_v33, 4 }
 0x1ab   :  { %v573_v9 = vrot.slane %v572_v7, 4  ;;  %v580_v10 = vrot.slane %v579_v8, 4  ;;  %v545_v48 = vmax.f32 %v543_v25, %v544_v36  ;;  %v538_v54 = vmax.f32 %v536_v33, %v537_v44 }
 0x1ac   :  { %v510_v11 = vpop.f32.mrf.mxu0  ;;  %v523_v12 = vpop.f32.mrf.mxu1 }
 0x1ad   :  { %v529_v13 = vrot.slane %v523_v12, 7  ;;  %v574_v14 = vadd.f32 %v573_v9, %v572_v7  ;;  %v581_v15 = vadd.f32 %v580_v10, %v579_v8  ;;  %v546_v59 = vrot.slane %v545_v48, 2 }
 0x1ae   :  { %v1036_v16 = vpop.f32.mrf.mxu2  ;;  %v487_v17 = vpop.f32.mrf.mxu3  ;;  %v539_v63 = vrot.slane %v538_v54, 2 }
 0x1af   :  { %v575_v18 = vrot.slane %v574_v14, 2  ;;  %v582_v19 = vrot.slane %v581_v15, 2  ;;  %v1039_v20 = vsel %vm530_vm14, %v510_v11, %v529_v13  ;;  %v568_v42 = vmul.f32 %v1036_v16, %v1036_v16 }
 0x1b0   :  { %v604_v26 = vmul.f32 %v1039_v20, %v1039_v20  ;;  %v569_v43 = vmul.f32 %v487_v17, %v487_v17  ;;  %v532_v52 = vsel %vm263_vm7, %v510_v11, %v529_v13  ;;  %v547_v2 = vmax.f32 %v545_v48, %v546_v59 }
 0x1b1   :  { %v576_v23 = vadd.f32 %v575_v18, %v574_v14  ;;  %v583_v24 = vadd.f32 %v582_v19, %v581_v15  ;;  %v1046_v60 = vrot.slane %v532_v52, 1  ;;  %v540_v7 = vmax.f32 %v538_v54, %v539_v63 }
 0x1b2   :  { %v608_v37 = vperm.slane %v604_v26, 0  ;;  %v609_v38 = vperm.slane %v604_v26, 1  ;;  %v548_v13 = vrot.slane %v547_v2, 1 }
 0x1b3   :  { %v577_v27 = vrot.slane %v576_v23, 1  ;;  %v584_v28 = vrot.slane %v583_v24, 1  ;;  %v605_v3 = vmul.f32 %v1046_v60, %v1046_v60  ;;  %v541_v26 = vrot.slane %v540_v7, 1 }
 0x1b4   :  { %v512_v30 = vpop.f32.mrf.mxu0  ;;  %v525_v31 = vpop.f32.mrf.mxu1 }
 0x1b5   :  { %v578_v34 = vadd.f32 %v577_v27, %v576_v23  ;;  %v585_v35 = vadd.f32 %v584_v28, %v583_v24  ;;  %v610_v14 = vperm.slane %v605_v3, 0  ;;  %v611_v19 = vperm.slane %v605_v3, 1 }
 0x1b6   :  { %v470_v39 = vpop.f32.mrf.mxu2  ;;  %v489_v40 = vpop.f32.mrf.mxu3 }
 0x1b7   :  { %v600_v41 = vmul.f32 0.0625, %v578_v34  ;;  %v601_v21 = vmul.f32 0.0625, %v585_v35  ;;  %v570_v22 = vmul.f32 %v470_v39, %v470_v39  ;;  %v571_v29 = vmul.f32 %v489_v40, %v489_v40 }
 0x1b8   :  { %v557_v8 = vmax.f32 %v487_v17, %v489_v40  ;;  %v550_v18 = vmax.f32 %v1036_v16, %v470_v39  ;;  %v549_v17 = vmax.f32 %v547_v2, %v548_v13  ;;  %v625_v34 = vperm.slane %v1039_v20, 1 }
 0x1b9   :  { %v616_v32 = vsub.f32 %v600_v41, %v608_v37  ;;  %v617_v45 = vsub.f32 %v601_v21, %v609_v38  ;;  %v586_v46 = vadd.f32 %v570_v22, %v568_v42  ;;  %v593_v47 = vadd.f32 %v571_v29, %v569_v43 }
 0x1ba   :  { %v558_v28 = vrot.slane %v557_v8, 4  ;;  %v551_v36 = vrot.slane %v550_v18, 4  ;;  %v542_v16 = vmax.f32 %v540_v7, %v541_v26 }
 0x1bb   :  { %v620_v49 = vmax.f32 %v616_v32, 0.0  ;;  %v621_v50 = vmax.f32 %v617_v45, 0.0  ;;  %v587_v51 = vrot.slane %v586_v46, 4  ;;  %v594_v53 = vrot.slane %v593_v47, 4 }
 0x1bc   :  { %v559_v41 = vmax.f32 %v557_v8, %v558_v28  ;;  %v552_v44 = vmax.f32 %v550_v18, %v551_v36  ;;  %v624_v32 = vperm.slane %v1039_v20, 0  ;;  %v633_v45 = vsub.f32 %v549_v17, %v625_v34 }
 0x1bd   :  { %v636_v55 = vadd.f32 1e-05, %v620_v49  ;;  %v637_v56 = vadd.f32 1e-05, %v621_v50  ;;  %v588_v57 = vadd.f32 %v587_v51, %v586_v46  ;;  %v595_v58 = vadd.f32 %v594_v53, %v593_v47 }
 0x1be   :  { %v694_v46 = vlaneseq  ;;  %v560_v49 = vrot.slane %v559_v41, 2  ;;  %v632_v50 = vsub.f32 %v542_v16, %v624_v32  ;;  %v553_v52 = vrot.slane %v552_v44, 2 }
 0x1bf   :  { %850 = vrsqrt.f32 %v636_v55  ;;  %v589_v61 = vrot.slane %v588_v57, 2  ;;  %v596_v62 = vrot.slane %v595_v58, 2  ;;  %vm646_vm1 = vweird.f32 %v636_v55 }
 0x1c0   :  { %852 = vrsqrt.f32 %v637_v56  ;;  %vm656_vm3 = vweird.f32 %v637_v56  ;;  %vm1059_vm5 = vcmp.lt.s32.totalorder %v694_v46, 256  ;;  %v561_v20 = vmax.f32 %v559_v41, %v560_v49 }
 0x1c1   :  { %v590_v0 = vadd.f32 %v589_v61, %v588_v57  ;;  %v597_v1 = vadd.f32 %v596_v62, %v595_v58  ;;  %v554_v59 = vmax.f32 %v552_v44, %v553_v52  ;;  %v627_v8 = vperm.slane %v1046_v60, 1 }
 0x1c3   :  { %v591_v4 = vrot.slane %v590_v0, 1  ;;  %v598_v5 = vrot.slane %v597_v1, 1  ;;  %v555_v2 = vrot.slane %v554_v59, 1 }
 0x1c5   :  { %v851_v6 = vpop.eup %850  ;;  %v592_v11 = vadd.f32 %v591_v4, %v590_v0  ;;  %v599_v12 = vadd.f32 %v598_v5, %v597_v1  ;;  %v562_v0 = vrot.slane %v561_v20, 1 }
 0x1c6   :  { %v853_v9 = vpop.eup %852  ;;  %v641_v10 = vmul.f32 %v851_v6, %v636_v55  ;;  %vm647_vm15 = vweird.f32 %v851_v6 }
 0x1c7   :  { %v651_v15 = vmul.f32 %v853_v9, %v637_v56  ;;  %v602_v24 = vmul.f32 0.0625, %v592_v11  ;;  %v603_v25 = vmul.f32 0.0625, %v599_v12  ;;  %vm657_vm0 = vweird.f32 %v853_v9  ;;  %vm1052_vm2 = vmor %vm646_vm1, %vm647_vm15 }
 0x1c8   :  { %v642_v23 = vmul.f32 %v851_v6, %v641_v10  ;;  %vm658_vm4 = vmor %vm656_vm3, %vm657_vm0  ;;  %v626_v12 = vperm.slane %v1046_v60, 0 }
 0x1c9   :  { %v652_v27 = vmul.f32 %v853_v9, %v651_v15  ;;  %v618_v31 = vsub.f32 %v602_v24, %v610_v14  ;;  %v619_v33 = vsub.f32 %v603_v25, %v611_v19 }
 0x1ca   :  { %v643_v30 = vmul.f32 0.5, %v642_v23 }
 0x1cb   :  { %v653_v35 = vmul.f32 0.5, %v652_v27  ;;  %v622_v38 = vmax.f32 %v618_v31, 0.0  ;;  %v623_v40 = vmax.f32 %v619_v33, 0.0 }
 0x1cc   :  { %v644_v37 = vsub.f32 1.5, %v643_v30 }
 0x1cd   :  { %v654_v39 = vsub.f32 1.5, %v653_v35  ;;  %v638_v42 = vadd.f32 1e-05, %v622_v38  ;;  %v639_v22 = vadd.f32 1e-05, %v623_v40 }
 0x1ce   :  { %v645_v21 = vmul.f32 %v851_v6, %v644_v37 }
 0x1cf   :  { %v655_v29 = vmul.f32 %v853_v9, %v654_v39  ;;  %854 = vrsqrt.f32 %v638_v42  ;;  %vm666_vm8 = vweird.f32 %v638_v42  ;;  %vm676_vm10 = vweird.f32 %v639_v22 }
 0x1d0   :  { %v649_v47 = vsel %vm1052_vm2, %v851_v6, %v645_v21  ;;  %856 = vrsqrt.f32 %v639_v22  ;;  %v563_v6 = vmax.f32 %v561_v20, %v562_v0 }
 0x1d1   :  { %v659_v48 = vsel %vm658_vm4, %v853_v9, %v655_v29  ;;  %v680_v53 = vmul.f32 %v649_v47, %v632_v50  ;;  %v556_v9 = vmax.f32 %v554_v59, %v555_v2 }
 0x1d2   :  { %v681_v51 = vmul.f32 %v659_v48, %v633_v45  ;;  %v635_v13 = vsub.f32 %v563_v6, %v627_v8 }
 0x1d3   :  { %v634_v18 = vsub.f32 %v556_v9, %v626_v12 }
 0x1d4   :  { %v688_v54 = vrot.slane %v681_v51, 7 }
 0x1d5   :  { %v855_v56 = vpop.eup %854 }
 0x1d6   :  { %v690_v57 = vsel %vm530_vm14, %v680_v53, %v688_v54  ;;  %v857_v58 = vpop.eup %856  ;;  %v661_v61 = vmul.f32 %v855_v56, %v638_v42  ;;  %vm667_vm6 = vweird.f32 %v855_v56 }
 0x1d7   :  { %698 = vst.msk [vmem:[#allocation8] sm:$0x3] %vm1059_vm5, %v690_v57  ;;  %v671_v62 = vmul.f32 %v857_v58, %v639_v22  ;;  %vm677_vm7 = vweird.f32 %v857_v58  ;;  %vm668_vm9 = vmor %vm666_vm8, %vm667_vm6 }
 0x1d8   :  { %v662_v63 = vmul.f32 %v855_v56, %v661_v61  ;;  %vm678_vm11 = vmor %vm676_vm10, %vm677_vm7 }
 0x1d9   :  { %v672_v1 = vmul.f32 %v857_v58, %v671_v62 }
 0x1da   :  { %v663_v3 = vmul.f32 0.5, %v662_v63 }
 0x1db   :  { %v673_v4 = vmul.f32 0.5, %v672_v1 }
 0x1dc   :  { %v664_v5 = vsub.f32 1.5, %v663_v3 }
 0x1dd   :  { %v674_v7 = vsub.f32 1.5, %v673_v4 }
 0x1de   :  { %v665_v10 = vmul.f32 %v855_v56, %v664_v5 }
 0x1df   :  { %v675_v11 = vmul.f32 %v857_v58, %v674_v7 }
 0x1e0   :  { %v669_v14 = vsel %vm668_vm9, %v855_v56, %v665_v10 }
 0x1e1   :  { %v679_v15 = vsel %vm678_vm11, %v857_v58, %v675_v11  ;;  %v682_v23 = vmul.f32 %v669_v14, %v634_v18 }
 0x1e2   :  { %v683_v19 = vmul.f32 %v679_v15, %v635_v13 }
 0x1e4   :  { %v689_v24 = vrot.slane %v683_v19, 7 }
 0x1e6   :  { %v691_v25 = vsel %vm530_vm14, %v682_v23, %v689_v24 }
 0x1e7   :  { %699 = vst.msk [vmem:[#allocation8 + $0x2] sm:$0x3] %vm1059_vm5, %v691_v25 }
 0x1e8   :  { %712 = dma.vmem_to_hbm [thread:$0]  %s705_s2, 64, %s707_s5, [#allocation4], %s968_s6, %s968_s6, %s969_s7  }
 0x1e9   :  { %958 = dma.done.wait [#allocation4], 64  }
 0x1ea   :  { %959 = vsyncadd [#allocation4], 4294967232 }
 0x1eb   :  { %717 = vsyncpa [#allocation3], 1 }
 0x1ec   :  { %718 = vsyncpa [#allocation6], 1 }
 0x1ed   :  { %719 = vsyncpa [#allocation4], 1 }

</bundles_post_ra>
